<compile_context>
chip_gen: v6e
topology: v6e:2x2x1
jax: 0.10.0
libtpu: 0.0.40
codegen_flags: <defaults>
</compile_context>

<pallas_src>
import numpy as np
import jax
import jax.numpy as jnp
from jax.experimental import pallas as pl
from jax.experimental.pallas import tpu as pltpu


_PAD_LOGIT = -1.0e4   # sigmoid(_PAD_LOGIT) == 0 exactly -> 0 contribution


def _soft_iou_bce_kernel(pred_ref, target_ref, out_ref,
                         inter_acc, sum_acc, bce_acc):
    k = pl.program_id(1)

    @pl.when(k == 0)
    def _():
        inter_acc[...] = jnp.zeros_like(inter_acc)
        sum_acc[...] = jnp.zeros_like(sum_acc)
        bce_acc[...] = jnp.zeros_like(bce_acc)

    x = pred_ref[...].astype(jnp.float32)       # (B, g, 8, 128) logits
    t = target_ref[...].astype(jnp.float32)

    # Stable sigmoid / log-sigmoid: 3 EUP ops per element, no divide, no select.
    e = jnp.exp(-jnp.abs(x))                    # exp(-|x|) <= 1, never overflows
    a = jnp.log1p(e)                            # softplus(-|x|)
    log_p_raw = jnp.minimum(x, 0.0) - a         # log(sigmoid(x))
    log_q_raw = -jnp.maximum(x, 0.0) - a        # log(1 - sigmoid(x))
    p = jnp.exp(log_p_raw)                      # sigmoid(x)

    # torch.nn.BCELoss: clamp logs at -100; where the f32 probability rounds
    # to exactly 0 or 1 torch hits log(0) = -inf and clamps to -100.
    log_p = jnp.where(p == 0.0, -100.0, jnp.maximum(log_p_raw, -100.0))
    log_q = jnp.where(p == 1.0, -100.0, jnp.maximum(log_q_raw, -100.0))

    # Negated per-element BCE: t*log_p + (1-t)*log_q, without forming (1-t).
    nbce = t * (log_p - log_q) + log_q

    # Sum ONLY the vreg-count axis (pure VPU adds) into (B, 8, 128)
    # accumulators; cross-sublane/cross-lane collapse is deferred to the
    # JAX epilogue.
    inter_acc[...] += jnp.sum(p * t, axis=1)
    sum_acc[...] += jnp.sum(p + t, axis=1)
    bce_acc[...] += jnp.sum(nbce, axis=1)

    @pl.when(k == pl.num_programs(1) - 1)
    def _():
        out_ref[0, 0] = inter_acc[...]          # lane-dense, unmasked stores
        out_ref[0, 1] = sum_acc[...]
        out_ref[0, 2] = bce_acc[...]


def _num_tensorcores():
    """Best-effort TensorCores-per-chip (2 on v7x, else 1); safe fallback 1."""
    try:
        info = pltpu.get_tpu_info()
    except Exception:
        return 1
    for attr in ("tensorcore_count", "num_tensorcores", "num_cores",
                 "cores_per_chip"):
        v = getattr(info, attr, None)
        if v is None:
            continue
        try:
            v = int(v)
        except (TypeError, ValueError):
            continue
        if v == 2:
            return 2
    return 1


def _round_up(x, m):
    return -(-x // m) * m


def soft_iou_loss(pred, target, *, max_block_bytes=1 * 1024 * 1024):
    """pred/target: [B, C, H, W] logits / labels (f32 or bf16). Scalar f32 loss."""
    B = pred.shape[0]
    N = int(np.prod(pred.shape[1:]))

    # ---- tiling: rows of 128 lanes, sized by the HBM dtype ------------------
    itemsize = max(jnp.dtype(pred.dtype).itemsize,
                   jnp.dtype(target.dtype).itemsize)
    bytes_per_row = B * 128 * itemsize
    cap = max(8, (max_block_bytes // bytes_per_row) // 8 * 8)
    R = _round_up(N, 128) // 128                 # 128-lane rows needed for N
    rows_tile = min(_round_up(R, 8), cap)        # multiple of 8, >= 8, <= cap

    n_par = 2 if _num_tensorcores() >= 2 else 1  # 1 on single-TC chips
    tiles = -(-R // rows_tile)
    if n_par == 2:
        if tiles >= 2:
            tiles = _round_up(tiles, 2)          # even split across both TCs
        else:
            n_par = 1
    steps_per_core = tiles // n_par
    R_pad = tiles * rows_tile

    # ---- pad (only when needed) with values that contribute exactly 0 ------
    pad = R_pad * 128 - N
    pred2 = pred.reshape(B, N)
    targ2 = target.reshape(B, N)
    if pad:
        pred2 = jnp.pad(pred2, ((0, 0), (0, pad)), constant_values=_PAD_LOGIT)
        targ2 = jnp.pad(targ2, ((0, 0), (0, pad)))
    # Present a native (8,128)-tiled 4-D view so the kernel needs no reshape.
    G, gt = R_pad // 8, rows_tile // 8
    pred4 = pred2.reshape(B, G, 8, 128)
    targ4 = targ2.reshape(B, G, 8, 128)

    def in_map(c, k):
        return (0, c * steps_per_core + k, 0, 0)

    # TODO(synk): on v7x, verify in the MLIR whether pltpu.CORE_PARALLEL (vs
    # plain PARALLEL) is required to guarantee sharding across both TCs.
    lead_sem = pltpu.PARALLEL if n_par > 1 else pltpu.ARBITRARY

    partials = pl.pallas_call(
        _soft_iou_bce_kernel,
        out_shape=jax.ShapeDtypeStruct((n_par, 3, B, 8, 128), jnp.float32),
        grid_spec=pltpu.PrefetchScalarGridSpec(
            num_scalar_prefetch=0,
            grid=(n_par, steps_per_core),
            in_specs=[
                pl.BlockSpec((B, gt, 8, 128), in_map),
                pl.BlockSpec((B, gt, 8, 128), in_map),
            ],
            out_specs=pl.BlockSpec((1, 3, B, 8, 128),
                                   lambda c, k: (c, 0, 0, 0, 0)),
            scratch_shapes=[
                pltpu.VMEM((B, 8, 128), jnp.float32),   # sum(p*t)
                pltpu.VMEM((B, 8, 128), jnp.float32),   # sum(p) + sum(t)
                pltpu.VMEM((B, 8, 128), jnp.float32),   # sum(t*lp + (1-t)*lq)
            ],
        ),
        compiler_params=pltpu.CompilerParams(
            dimension_semantics=(lead_sem, pltpu.ARBITRARY),
            vmem_limit_bytes=32 * 1024 * 1024,
        ),
    )(pred4, targ4)

    # Tiny scalar epilogue in plain JAX: collapse cores, sublanes, lanes.
    sums = jnp.sum(partials, axis=(0, 3, 4))     # (3, B)
    inter = sums[0]
    psum_tsum = sums[1]
    bce_total = -jnp.sum(sums[2])                # single negation here
    iou = inter / (psum_tsum - inter)            # smooth = 0
    return (1.0 - jnp.mean(iou)) + bce_total / float(B * N)


def _reference(pred, target):
    p = jax.nn.sigmoid(pred.astype(jnp.float32))
    t = target.astype(jnp.float32)
    inter = jnp.sum(p * t, axis=(1, 2, 3))
    ps = jnp.sum(p, axis=(1, 2, 3))
    ts = jnp.sum(t, axis=(1, 2, 3))
    iou = inter / (ps + ts - inter)
    bce = -(t * jnp.maximum(jnp.log(p), -100.0)
            + (1.0 - t) * jnp.maximum(jnp.log1p(-p), -100.0))
    return (1.0 - jnp.mean(iou)) + jnp.mean(bce)


if __name__ == "__main__":
    key = jax.random.PRNGKey(0)
    k1, k2 = jax.random.split(key)
    B, C, H, W = 2, 4, 16, 16
    pred = jax.random.normal(k1, (B, C, H, W), dtype=jnp.float32)
    target = jax.random.bernoulli(k2, 0.3, (B, C, H, W)).astype(jnp.float32)

    loss = jax.block_until_ready(soft_iou_loss(pred, target))
    ref = jax.block_until_ready(_reference(pred, target))
    np.testing.assert_allclose(np.asarray(loss), np.asarray(ref),
                               rtol=1e-5, atol=1e-5)
    print("KERNEL_OK")
</pallas_src>

<mosaic_0001>
module attributes {stable_mosaic.version = 11 : i64} {
  func.func @_soft_iou_bce_kernel(%arg0: i32, %arg1: i32, %arg2: memref<2x1x8x128xf32, #tpu.memory_space<vmem>>, %arg3: memref<2x1x8x128xf32, #tpu.memory_space<vmem>>, %arg4: memref<1x3x2x8x128xf32, #tpu.memory_space<vmem>>, %arg5: memref<2x8x128xf32, #tpu.memory_space<vmem>>, %arg6: memref<2x8x128xf32, #tpu.memory_space<vmem>>, %arg7: memref<2x8x128xf32, #tpu.memory_space<vmem>>) attributes {dimension_semantics = [#tpu.dimension_semantics<arbitrary>, #tpu.dimension_semantics<arbitrary>], iteration_bounds = array<i64: 1, 1>, scalar_prefetch = 0 : i64, scratch_operands = 3 : i64, tpu.core_type = #tpu.core_type<tc>, window_params = [{transform_indices = @transform_0, window_bounds = array<i64: 2, 1, 8, 128>}, {transform_indices = @transform_1, window_bounds = array<i64: 2, 1, 8, 128>}, {transform_indices = @transform_2, window_bounds = array<i64: 1, 3, 2, 8, 128>}]} {
    %c0_i32 = arith.constant 0 : i32
    %0 = arith.cmpi eq, %arg1, %c0_i32 : i32
    %1 = arith.extui %0 : i1 to i32
    %c0_i32_0 = arith.constant 0 : i32
    %2 = arith.cmpi ne, %1, %c0_i32_0 : i32
    scf.if %2 {
      %cst_40 = arith.constant 0.000000e+00 : f32
      %51 = vector.broadcast %cst_40 : f32 to vector<2x8x128xf32>
      %c0_41 = arith.constant 0 : index
      %c0_42 = arith.constant 0 : index
      %c0_43 = arith.constant 0 : index
      %52 = vector.load %arg5[%c0_41, %c0_42, %c0_43] : memref<2x8x128xf32, #tpu.memory_space<vmem>>, vector<2x8x128xf32>
      tpu.vector_store %arg5[%c0_41, %c0_42, %c0_43], %51 {strides = array<i32>} : memref<2x8x128xf32, #tpu.memory_space<vmem>>, vector<2x8x128xf32>,
      %cst_44 = arith.constant 0.000000e+00 : f32
      %53 = vector.broadcast %cst_44 : f32 to vector<2x8x128xf32>
      %c0_45 = arith.constant 0 : index
      %c0_46 = arith.constant 0 : index
      %c0_47 = arith.constant 0 : index
      %54 = vector.load %arg6[%c0_45, %c0_46, %c0_47] : memref<2x8x128xf32, #tpu.memory_space<vmem>>, vector<2x8x128xf32>
      tpu.vector_store %arg6[%c0_45, %c0_46, %c0_47], %53 {strides = array<i32>} : memref<2x8x128xf32, #tpu.memory_space<vmem>>, vector<2x8x128xf32>,
      %cst_48 = arith.constant 0.000000e+00 : f32
      %55 = vector.broadcast %cst_48 : f32 to vector<2x8x128xf32>
      %c0_49 = arith.constant 0 : index
      %c0_50 = arith.constant 0 : index
      %c0_51 = arith.constant 0 : index
      %56 = vector.load %arg7[%c0_49, %c0_50, %c0_51] : memref<2x8x128xf32, #tpu.memory_space<vmem>>, vector<2x8x128xf32>
      tpu.vector_store %arg7[%c0_49, %c0_50, %c0_51], %55 {strides = array<i32>} : memref<2x8x128xf32, #tpu.memory_space<vmem>>, vector<2x8x128xf32>,
    } else {
    }
    %c0 = arith.constant 0 : index
    %c0_1 = arith.constant 0 : index
    %c0_2 = arith.constant 0 : index
    %c0_3 = arith.constant 0 : index
    %3 = vector.load %arg2[%c0, %c0_1, %c0_2, %c0_3] : memref<2x1x8x128xf32, #tpu.memory_space<vmem>>, vector<2x1x8x128xf32>
    %c0_4 = arith.constant 0 : index
    %c0_5 = arith.constant 0 : index
    %c0_6 = arith.constant 0 : index
    %c0_7 = arith.constant 0 : index
    %4 = vector.load %arg3[%c0_4, %c0_5, %c0_6, %c0_7] : memref<2x1x8x128xf32, #tpu.memory_space<vmem>>, vector<2x1x8x128xf32>
    %5 = math.absf %3 : vector<2x1x8x128xf32>
    %cst = arith.constant 0.000000e+00 : f32
    %6 = vector.broadcast %cst : f32 to vector<2x1x8x128xf32>
    %7 = arith.subf %6, %5 : vector<2x1x8x128xf32>
    %8 = math.exp %7 : vector<2x1x8x128xf32>
    %9 = math.log1p %8 : vector<2x1x8x128xf32>
    %cst_8 = arith.constant 0.000000e+00 : f32
    %10 = vector.broadcast %cst_8 : f32 to vector<2x1x8x128xf32>
    %11 = arith.minimumf %3, %10 : vector<2x1x8x128xf32>
    %12 = arith.subf %11, %9 : vector<2x1x8x128xf32>
    %cst_9 = arith.constant 0.000000e+00 : f32
    %13 = vector.broadcast %cst_9 : f32 to vector<2x1x8x128xf32>
    %14 = arith.maximumf %3, %13 : vector<2x1x8x128xf32>
    %cst_10 = arith.constant 0.000000e+00 : f32
    %15 = vector.broadcast %cst_10 : f32 to vector<2x1x8x128xf32>
    %16 = arith.subf %15, %14 : vector<2x1x8x128xf32>
    %17 = arith.subf %16, %9 : vector<2x1x8x128xf32>
    %18 = math.exp %12 : vector<2x1x8x128xf32>
    %cst_11 = arith.constant 0.000000e+00 : f32
    %19 = vector.broadcast %cst_11 : f32 to vector<2x1x8x128xf32>
    %20 = arith.cmpf oeq, %18, %19 : vector<2x1x8x128xf32>
    %cst_12 = arith.constant -1.000000e+02 : f32
    %21 = vector.broadcast %cst_12 : f32 to vector<2x1x8x128xf32>
    %22 = arith.maximumf %12, %21 : vector<2x1x8x128xf32>
    %cst_13 = arith.constant -1.000000e+02 : f32
    %23 = vector.broadcast %cst_13 : f32 to vector<2x1x8x128xf32>
    %24 = arith.select %20, %23, %22 : vector<2x1x8x128xi1>, vector<2x1x8x128xf32>
    %cst_14 = arith.constant 1.000000e+00 : f32
    %25 = vector.broadcast %cst_14 : f32 to vector<2x1x8x128xf32>
    %26 = arith.cmpf oeq, %18, %25 : vector<2x1x8x128xf32>
    %cst_15 = arith.constant -1.000000e+02 : f32
    %27 = vector.broadcast %cst_15 : f32 to vector<2x1x8x128xf32>
    %28 = arith.maximumf %17, %27 : vector<2x1x8x128xf32>
    %cst_16 = arith.constant -1.000000e+02 : f32
    %29 = vector.broadcast %cst_16 : f32 to vector<2x1x8x128xf32>
    %30 = arith.select %26, %29, %28 : vector<2x1x8x128xi1>, vector<2x1x8x128xf32>
    %31 = arith.subf %24, %30 : vector<2x1x8x128xf32>
    %32 = arith.mulf %4, %31 : vector<2x1x8x128xf32>
    %33 = arith.addf %32, %30 : vector<2x1x8x128xf32>
    %c0_17 = arith.constant 0 : index
    %c0_18 = arith.constant 0 : index
    %c0_19 = arith.constant 0 : index
    %34 = vector.load %arg5[%c0_17, %c0_18, %c0_19] : memref<2x8x128xf32, #tpu.memory_space<vmem>>, vector<2x8x128xf32>
    %35 = arith.mulf %18, %4 : vector<2x1x8x128xf32>
    %cst_20 = arith.constant dense<0.000000e+00> : vector<2x8x128xf32>
    %36 = vector.multi_reduction <add>, %35, %cst_20 [1] : vector<2x1x8x128xf32> to vector<2x8x128xf32>
    %37 = arith.addf %34, %36 : vector<2x8x128xf32>
    %c0_21 = arith.constant 0 : index
    %c0_22 = arith.constant 0 : index
    %c0_23 = arith.constant 0 : index
    %38 = vector.load %arg5[%c0_21, %c0_22, %c0_23] : memref<2x8x128xf32, #tpu.memory_space<vmem>>, vector<2x8x128xf32>
    tpu.vector_store %arg5[%c0_21, %c0_22, %c0_23], %37 {strides = array<i32>} : memref<2x8x128xf32, #tpu.memory_space<vmem>>, vector<2x8x128xf32>,
    %c0_24 = arith.constant 0 : index
    %c0_25 = arith.constant 0 : index
    %c0_26 = arith.constant 0 : index
    %39 = vector.load %arg6[%c0_24, %c0_25, %c0_26] : memref<2x8x128xf32, #tpu.memory_space<vmem>>, vector<2x8x128xf32>
    %40 = arith.addf %18, %4 : vector<2x1x8x128xf32>
    %cst_27 = arith.constant dense<0.000000e+00> : vector<2x8x128xf32>
    %41 = vector.multi_reduction <add>, %40, %cst_27 [1] : vector<2x1x8x128xf32> to vector<2x8x128xf32>
    %42 = arith.addf %39, %41 : vector<2x8x128xf32>
    %c0_28 = arith.constant 0 : index
    %c0_29 = arith.constant 0 : index
    %c0_30 = arith.constant 0 : index
    %43 = vector.load %arg6[%c0_28, %c0_29, %c0_30] : memref<2x8x128xf32, #tpu.memory_space<vmem>>, vector<2x8x128xf32>
    tpu.vector_store %arg6[%c0_28, %c0_29, %c0_30], %42 {strides = array<i32>} : memref<2x8x128xf32, #tpu.memory_space<vmem>>, vector<2x8x128xf32>,
    %c0_31 = arith.constant 0 : index
    %c0_32 = arith.constant 0 : index
    %c0_33 = arith.constant 0 : index
    %44 = vector.load %arg7[%c0_31, %c0_32, %c0_33] : memref<2x8x128xf32, #tpu.memory_space<vmem>>, vector<2x8x128xf32>
    %cst_34 = arith.constant dense<0.000000e+00> : vector<2x8x128xf32>
    %45 = vector.multi_reduction <add>, %33, %cst_34 [1] : vector<2x1x8x128xf32> to vector<2x8x128xf32>
    %46 = arith.addf %44, %45 : vector<2x8x128xf32>
    %c0_35 = arith.constant 0 : index
    %c0_36 = arith.constant 0 : index
    %c0_37 = arith.constant 0 : index
    %47 = vector.load %arg7[%c0_35, %c0_36, %c0_37] : memref<2x8x128xf32, #tpu.memory_space<vmem>>, vector<2x8x128xf32>
    tpu.vector_store %arg7[%c0_35, %c0_36, %c0_37], %46 {strides = array<i32>} : memref<2x8x128xf32, #tpu.memory_space<vmem>>, vector<2x8x128xf32>,
    %c0_i32_38 = arith.constant 0 : i32
    %48 = arith.cmpi eq, %arg1, %c0_i32_38 : i32
    %49 = arith.extui %48 : i1 to i32
    %c0_i32_39 = arith.constant 0 : i32
    %50 = arith.cmpi ne, %49, %c0_i32_39 : i32
    scf.if %50 {
      %c0_40 = arith.constant 0 : index
      %c0_41 = arith.constant 0 : index
      %c0_42 = arith.constant 0 : index
      %51 = vector.load %arg5[%c0_40, %c0_41, %c0_42] : memref<2x8x128xf32, #tpu.memory_space<vmem>>, vector<2x8x128xf32>
      %c0_43 = arith.constant 0 : index
      %c0_44 = arith.constant 0 : index
      %c0_45 = arith.constant 0 : index
      %c0_46 = arith.constant 0 : index
      %c0_47 = arith.constant 0 : index
      %52 = vector.load %arg4[%c0_43, %c0_44, %c0_45, %c0_46, %c0_47] : memref<1x3x2x8x128xf32, #tpu.memory_space<vmem>>, vector<1x1x2x8x128xf32>
      %53 = vector.shape_cast %52 : vector<1x1x2x8x128xf32> to vector<2x8x128xf32>
      %54 = vector.shape_cast %51 : vector<2x8x128xf32> to vector<1x1x2x8x128xf32>
      tpu.vector_store %arg4[%c0_43, %c0_44, %c0_45, %c0_46, %c0_47], %54 {strides = array<i32>} : memref<1x3x2x8x128xf32, #tpu.memory_space<vmem>>, vector<1x1x2x8x128xf32>,
      %c0_48 = arith.constant 0 : index
      %c0_49 = arith.constant 0 : index
      %c0_50 = arith.constant 0 : index
      %55 = vector.load %arg6[%c0_48, %c0_49, %c0_50] : memref<2x8x128xf32, #tpu.memory_space<vmem>>, vector<2x8x128xf32>
      %c0_51 = arith.constant 0 : index
      %c1 = arith.constant 1 : index
      %c0_52 = arith.constant 0 : index
      %c0_53 = arith.constant 0 : index
      %c0_54 = arith.constant 0 : index
      %56 = vector.load %arg4[%c0_51, %c1, %c0_52, %c0_53, %c0_54] : memref<1x3x2x8x128xf32, #tpu.memory_space<vmem>>, vector<1x1x2x8x128xf32>
      %57 = vector.shape_cast %56 : vector<1x1x2x8x128xf32> to vector<2x8x128xf32>
      %58 = vector.shape_cast %55 : vector<2x8x128xf32> to vector<1x1x2x8x128xf32>
      tpu.vector_store %arg4[%c0_51, %c1, %c0_52, %c0_53, %c0_54], %58 {strides = array<i32>} : memref<1x3x2x8x128xf32, #tpu.memory_space<vmem>>, vector<1x1x2x8x128xf32>,
      %c0_55 = arith.constant 0 : index
      %c0_56 = arith.constant 0 : index
      %c0_57 = arith.constant 0 : index
      %59 = vector.load %arg7[%c0_55, %c0_56, %c0_57] : memref<2x8x128xf32, #tpu.memory_space<vmem>>, vector<2x8x128xf32>
      %c0_58 = arith.constant 0 : index
      %c2 = arith.constant 2 : index
      %c0_59 = arith.constant 0 : index
      %c0_60 = arith.constant 0 : index
      %c0_61 = arith.constant 0 : index
      %60 = vector.load %arg4[%c0_58, %c2, %c0_59, %c0_60, %c0_61] : memref<1x3x2x8x128xf32, #tpu.memory_space<vmem>>, vector<1x1x2x8x128xf32>
      %61 = vector.shape_cast %60 : vector<1x1x2x8x128xf32> to vector<2x8x128xf32>
      %62 = vector.shape_cast %59 : vector<2x8x128xf32> to vector<1x1x2x8x128xf32>
      tpu.vector_store %arg4[%c0_58, %c2, %c0_59, %c0_60, %c0_61], %62 {strides = array<i32>} : memref<1x3x2x8x128xf32, #tpu.memory_space<vmem>>, vector<1x1x2x8x128xf32>,
    } else {
    }
    return
  }
  func.func @transform_0(%arg0: i32, %arg1: i32) -> (i32, i32, i32, i32) {
    %c1_i32 = arith.constant 1 : i32
    %0 = arith.muli %arg0, %c1_i32 : i32
    %1 = arith.addi %0, %arg1 : i32
    %c0_i32 = arith.constant 0 : i32
    %c0_i32_0 = arith.constant 0 : i32
    %c0_i32_1 = arith.constant 0 : i32
    %c0_i32_2 = arith.constant 0 : i32
    return %c0_i32, %1, %c0_i32_0, %c0_i32_1 : i32, i32, i32, i32
  }
  func.func @transform_1(%arg0: i32, %arg1: i32) -> (i32, i32, i32, i32) {
    %c1_i32 = arith.constant 1 : i32
    %0 = arith.muli %arg0, %c1_i32 : i32
    %1 = arith.addi %0, %arg1 : i32
    %c0_i32 = arith.constant 0 : i32
    %c0_i32_0 = arith.constant 0 : i32
    %c0_i32_1 = arith.constant 0 : i32
    %c0_i32_2 = arith.constant 0 : i32
    return %c0_i32, %1, %c0_i32_0, %c0_i32_1 : i32, i32, i32, i32
  }
  func.func @transform_2(%arg0: i32, %arg1: i32) -> (i32, i32, i32, i32, i32) {
    %c0_i32 = arith.constant 0 : i32
    %c0_i32_0 = arith.constant 0 : i32
    %c0_i32_1 = arith.constant 0 : i32
    %c0_i32_2 = arith.constant 0 : i32
    %c0_i32_3 = arith.constant 0 : i32
    return %arg0, %c0_i32, %c0_i32_0, %c0_i32_1, %c0_i32_2 : i32, i32, i32, i32, i32
  }
}

</mosaic_0001>

<bundles_post_ra>
// kernel: tpu_custom_call.1
= control target key start
LH: loop header
LB: loop body
LE: loop exit
PB: predicated region body
PF: predicated region fallthrough
CT: control target
= control target key end

     0   :  { %7 = vsyncpa [#allocation6], 0  ;;  %s304_s0 = inlined_call_operand.hbm [shape: f32[2,1,8,128], index: 0, kind: input, shape index: {}]   ;;  %s305_s1 = inlined_call_operand.hbm [shape: f32[2,1,8,128], index: 1, kind: input, shape index: {}]   ;;  %s306_s2 = inlined_call_operand.hbm [shape: f32[1,3,2,8,128], index: 2, kind: output, shape index: {}]  }
   0x1   :  { %8 = vsyncpa [#allocation9], 0 }
   0x2   :  { %9 = vsyncpa [#allocation7], 0  ;;  %s266_s9 = smov [#allocation5]  }
   0x3   :  { %s18_s10 = sshll.u32 %s266_s9, 4  ;;  %s19_s10 = int_to_ptr.vmem [resolvable:$true] %s18_s10 }
   0x4   :  { %s208_s11 = scalar_lea.vmem %s19_s10, 256  ;;  %p213_p1 = scmp.lt.s32.totalorder %s19_s10, %s19_s10 }
   0x5   :  { %p209_p0 = scmp.ne.s32.totalorder %s19_s10, %s208_s11  ;;  %p214_p2 = scmp.lt.s32.totalorder %s208_s11, %s208_s11 }
   0x7   :  { %p215_p3 = por %p214_p2, %p213_p1 }
   0x9   :  { %p216_p4 = pnand %p215_p3, %p209_p0 }
   0xb   :  { %219 = shalt.err (!%p216_p4)
}
   0xc   :  { %s267_s12 = smov 128   ;;  %s268_s13 = smov 8  }
   0xd   :  { %24 = dma.hbm_to_vmem [thread:$0]  %s304_s0, 256, %s19_s10, [#allocation6], %s267_s12, %s267_s12, %s268_s13  }
   0xe   :  { %s269_s16 = smov [#allocation8]  }
   0xf   :  { %s33_s17 = sshll.u32 %s269_s16, 4  ;;  %s34_s17 = int_to_ptr.vmem [resolvable:$true] %s33_s17 }
  0x10   :  { %s228_s18 = scalar_lea.vmem %s34_s17, 256  ;;  %p233_p6 = scmp.lt.s32.totalorder %s34_s17, %s34_s17 }
  0x11   :  { %p229_p5 = scmp.ne.s32.totalorder %s34_s17, %s228_s18  ;;  %p234_p7 = scmp.lt.s32.totalorder %s228_s18, %s228_s18 }
  0x13   :  { %p235_p8 = por %p234_p7, %p233_p6 }
  0x15   :  { %p236_p9 = pnand %p235_p8, %p229_p5 }
  0x17   :  { %239 = shalt.err (!%p236_p9)
}
  0x18   :  { %39 = dma.hbm_to_vmem [thread:$0]  %s305_s1, 256, %s34_s17, [#allocation9], %s267_s12, %s267_s12, %s268_s13  }
  0x19   :  { %260 = dma.done.wait [#allocation6], 256  }
  0x1a   :  { %261 = vsyncadd [#allocation6], 4294967040 }
  0x1b   :  { %262 = dma.done.wait [#allocation9], 256  }
  0x1c   :  { %263 = vsyncadd [#allocation9], 4294967040  ;;  %v58_v0 = vld [vmem:[#allocation5] sm:$0xff]  ;;  %v59_v1 = vld [vmem:[#allocation5 + $0x8] sm:$0xff]  ;;  %s270_s0 = smov [#allocation10]  }
  0x1d   :  { %v62_v2 = vand.u32 2147483647, %v58_v0  ;;  %v63_v3 = vand.u32 2147483647, %v59_v1  ;;  %v88_v20 = vmin.f32 %v58_v0, 0.0  ;;  %v89_v24 = vmin.f32 %v59_v1, 0.0 }
  0x1e   :  { %v92_v32 = vmax.f32 %v58_v0, 0.0  ;;  %v93_v33 = vmax.f32 %v59_v1, 0.0  ;;  %v60_v41 = vld [vmem:[#allocation8] sm:$0xff]  ;;  %v61_v46 = vld [vmem:[#allocation8 + $0x8] sm:$0xff]  ;;  %s170_s1 = sshll.u32 %s270_s0, 4  ;;  %s171_s1 = int_to_ptr.vmem [resolvable:$true] %s170_s1 }
  0x1f   :  { %v64_v4 = vsub.f32 0.0, %v62_v2  ;;  %v65_v5 = vsub.f32 0.0, %v63_v3  ;;  %s240_s21 = scalar_lea.vmem %s171_s1, 768  ;;  %p245_p11 = scmp.lt.s32.totalorder %s171_s1, %s171_s1 }
  0x20   :  { %v94_v34 = vsub.f32 0.0, %v92_v32  ;;  %v95_v35 = vsub.f32 0.0, %v93_v33  ;;  %p241_p10 = scmp.ne.s32.totalorder %s171_s1, %s240_s21  ;;  %p246_p12 = scmp.lt.s32.totalorder %s240_s21, %s240_s21 }
  0x21   :  { %v66_v6 = vmul.f32 1.442695, %v64_v4  ;;  %v68_v7 = vmul.f32 1.442695, %v65_v5 }
  0x22   :  { %p247_p13 = por %p246_p12, %p245_p11 }
  0x23   :  { %188 = vpow2.f32 %v66_v6 }
  0x24   :  { %190 = vpow2.f32 %v68_v7  ;;  %p248_p0 = pnand %p247_p13, %p241_p10 }
  0x30   :  { %v189_v8 = vpop.eup %188 }
  0x31   :  { %v191_v9 = vpop.eup %190  ;;  %v70_v10 = vadd.f32 1.0, %v189_v8  ;;  %v73_v12 = vmul.f32 -0.5, %v189_v8  ;;  %v76_v15 = vand.u32 2147483647, %v189_v8 }
  0x32   :  { %v79_v11 = vadd.f32 1.0, %v191_v9  ;;  %v82_v13 = vmul.f32 -0.5, %v191_v9  ;;  %v85_v17 = vand.u32 2147483647, %v191_v9 }
  0x33   :  { %192 = vlog2.f32 %v70_v10  ;;  %v74_v14 = vadd.f32 1.0, %v73_v12  ;;  %vm77_vm0 = vcmp.lt.f32.partialorder %v76_v15, 0.0004427343 }
  0x34   :  { %194 = vlog2.f32 %v79_v11  ;;  %v83_v16 = vadd.f32 1.0, %v82_v13  ;;  %vm86_vm1 = vcmp.lt.f32.partialorder %v85_v17, 0.0004427343 }
  0x35   :  { %v75_v18 = vmul.f32 %v189_v8, %v74_v14 }
  0x36   :  { %v84_v21 = vmul.f32 %v191_v9, %v83_v16 }
  0x40   :  { %v193_v19 = vpop.eup %192 }
  0x41   :  { %v195_v22 = vpop.eup %194  ;;  %v72_v23 = vmul.f32 0.6931472, %v193_v19 }
  0x42   :  { %v81_v25 = vmul.f32 0.6931472, %v195_v22 }
  0x43   :  { %v78_v26 = vsel %vm77_vm0, %v75_v18, %v72_v23 }
  0x44   :  { %v90_v27 = vsub.f32 %v88_v20, %v78_v26  ;;  %v87_v28 = vsel %vm86_vm1, %v84_v21, %v81_v25  ;;  %v96_v36 = vsub.f32 %v94_v34, %v78_v26 }
  0x45   :  { %v91_v29 = vsub.f32 %v89_v24, %v87_v28  ;;  %v97_v37 = vsub.f32 %v95_v35, %v87_v28 }
  0x46   :  { %v98_v30 = vmul.f32 1.442695, %v90_v27  ;;  %v104_v38 = vmax.f32 %v90_v27, -100.0  ;;  %v110_v39 = vmax.f32 %v96_v36, -100.0 }
  0x47   :  { %v100_v31 = vmul.f32 1.442695, %v91_v29  ;;  %v105_v42 = vmax.f32 %v91_v29, -100.0  ;;  %v111_v43 = vmax.f32 %v97_v37, -100.0 }
  0x48   :  { %196 = vpow2.f32 %v98_v30 }
  0x49   :  { %198 = vpow2.f32 %v100_v31 }
  0x55   :  { %v197_v40 = vpop.eup %196 }
  0x56   :  { %v199_v44 = vpop.eup %198  ;;  %v122_v45 = vmul.f32 %v197_v40, %v60_v41  ;;  %v132_v47 = vadd.f32 %v197_v40, %v60_v41  ;;  %vm102_vm2 = vcmp.eq.f32.partialorder %v197_v40, 0.0  ;;  %vm108_vm3 = vcmp.eq.f32.partialorder %v197_v40, 1.0 }
  0x57   :  { %v123_v48 = vmul.f32 %v199_v44, %v61_v46  ;;  %v133_v49 = vadd.f32 %v199_v44, %v61_v46  ;;  %v106_v50 = vsel %vm102_vm2, -100.0, %v104_v38  ;;  %v112_v51 = vsel %vm108_vm3, -100.0, %v110_v39 }
  0x58   :  { %153 = vst [vmem:[#allocation10] sm:$0xff] %v122_v45  ;;  %158 = vst [vmem:[#allocation10 + $0x10] sm:$0xff] %v132_v47  ;;  %v114_v52 = vsub.f32 %v106_v50, %v112_v51  ;;  %vm103_vm4 = vcmp.eq.f32.partialorder %v199_v44, 0.0  ;;  %vm109_vm5 = vcmp.eq.f32.partialorder %v199_v44, 1.0 }
  0x59   :  { %154 = vst [vmem:[#allocation10 + $0x8] sm:$0xff] %v123_v48  ;;  %159 = vst [vmem:[#allocation10 + $0x18] sm:$0xff] %v133_v49  ;;  %v107_v53 = vsel %vm103_vm4, -100.0, %v105_v42  ;;  %v113_v54 = vsel %vm109_vm5, -100.0, %v111_v43 }
  0x5a   :  { %v116_v55 = vmul.f32 %v114_v52, %v60_v41  ;;  %v115_v56 = vsub.f32 %v107_v53, %v113_v54 }
  0x5c   :  { %v118_v57 = vadd.f32 %v116_v55, %v112_v51  ;;  %v117_v58 = vmul.f32 %v115_v56, %v61_v46 }
  0x5e   :  { %163 = vst [vmem:[#allocation10 + $0x20] sm:$0xff] %v118_v57  ;;  %v119_v59 = vadd.f32 %v117_v58, %v113_v54 }
  0x60   :  { %164 = vst [vmem:[#allocation10 + $0x28] sm:$0xff] %v119_v59 }
  0x61   :  { %251 = shalt.err (!%p248_p0)
}
  0x62   :  { %176 = dma.vmem_to_hbm [thread:$0]  %s171_s1, 768, %s306_s2, [#allocation7], %s267_s12, %s267_s12, %s268_s13  }
  0x63   :  { %264 = dma.done.wait [#allocation7], 768  }
  0x64   :  { %265 = vsyncadd [#allocation7], 4294966528 }
  0x65   :  { %180 = vsyncpa [#allocation6], 1 }
  0x66   :  { %181 = vsyncpa [#allocation9], 1 }
  0x67   :  { %182 = vsyncpa [#allocation7], 1 }

</bundles_post_ra>
